<compile_context>
chip_gen: v6e
topology: v6e:2x2x1
jax: 0.10.0
libtpu: 0.0.40
codegen_flags: <defaults>
</compile_context>

<pallas_src>
import functools

import jax
import jax.numpy as jnp
from jax.experimental import pallas as pl
from jax.experimental.pallas import tpu as pltpu

IMG_SHAPE = (2,)                 # 2D mixture-of-Gaussians generator -> 2 output coords
Z_DIM, HIDDEN, OUT_DIM = 100, 32, 2
Z_PAD = 128                      # pad K to the 128-lane width
TB_MAX = 2048                    # batch tile (rows); multiple of 8 sublanes


def _round_up(x, m):
    return ((x + m - 1) // m) * m


def generator_kernel(z_ref, w1_ref, b1_ref, w2_ref, b2_ref, out_ref):
    # Layer 1: (TB,128)bf16 @ (128,32)bf16 -> f32 on the MXU.
    h = jnp.dot(z_ref[...], w1_ref[...], preferred_element_type=jnp.float32)
    h = h + b1_ref[...]                          # bias broadcast (1, 32), f32
    h = jnp.where(h > 0, h, 0.2 * h)             # LeakyReLU(0.2), f32 on the VPU
    # Layer 2: (TB,32)bf16 @ (32,2)bf16 -> f32 accumulation.
    o = jnp.dot(h.astype(w2_ref.dtype), w2_ref[...],
                preferred_element_type=jnp.float32)
    o = o + b2_ref[...]                          # bias broadcast (1, 2)
    out_ref[...] = jnp.tanh(o)                   # Tanh (EUP), f32


@functools.partial(jax.jit, static_argnames=("img_shape",))
def generator_forward(z, w1, b1, w2, b2, img_shape=IMG_SHAPE):
    B = z.shape[0]
    TB = min(TB_MAX, _round_up(B, 8))            # tile rows: multiple of 8 sublanes
    B_pad = _round_up(B, TB)                     # pad batch so the grid is even

    # bf16 inputs halve the dominant HBM traffic (z); zero-pad K 100 -> 128.
    z_p = jnp.zeros((B_pad, Z_PAD), jnp.bfloat16).at[:B, :Z_DIM].set(
        z.astype(jnp.bfloat16))
    w1_p = jnp.zeros((Z_PAD, HIDDEN), jnp.bfloat16).at[:Z_DIM, :].set(
        w1.astype(jnp.bfloat16))
    b1_p = b1.astype(jnp.float32).reshape(1, HIDDEN)
    w2_p = w2.astype(jnp.bfloat16)
    b2_p = b2.astype(jnp.float32).reshape(1, OUT_DIM)

    out = pl.pallas_call(
        generator_kernel,
        out_shape=jax.ShapeDtypeStruct((B_pad, OUT_DIM), jnp.float32),
        grid=(B_pad // TB,),
        in_specs=[
            pl.BlockSpec((TB, Z_PAD), lambda i: (i, 0)),        # z: streamed per tile
            pl.BlockSpec((Z_PAD, HIDDEN), lambda i: (0, 0)),    # w1: resident in VMEM
            pl.BlockSpec((1, HIDDEN), lambda i: (0, 0)),        # b1: resident
            pl.BlockSpec((HIDDEN, OUT_DIM), lambda i: (0, 0)),  # w2: resident
            pl.BlockSpec((1, OUT_DIM), lambda i: (0, 0)),       # b2: resident
        ],
        out_specs=pl.BlockSpec((TB, OUT_DIM), lambda i: (i, 0)),
        compiler_params=pltpu.CompilerParams(
            dimension_semantics=("parallel",)),                 # shard batch over v7x's 2 TCs
    )(z_p, w1_p, b1_p, w2_p, b2_p)

    # drop batch padding; view((B, *img_shape)) is pure reshape glue in plain JAX
    return out[:B].reshape((B, *img_shape))


def init_params(key):
    # Deterministic init mimicking PyTorch nn.Linear default: U(-1/sqrt(fan_in), 1/sqrt(fan_in))
    k1, k2, k3, k4 = jax.random.split(key, 4)
    lim1 = 1.0 / jnp.sqrt(jnp.float32(Z_DIM))
    lim2 = 1.0 / jnp.sqrt(jnp.float32(HIDDEN))
    w1 = jax.random.uniform(k1, (Z_DIM, HIDDEN), jnp.float32, -lim1, lim1)
    b1 = jax.random.uniform(k2, (1, HIDDEN), jnp.float32, -lim1, lim1)
    w2 = jax.random.uniform(k3, (HIDDEN, OUT_DIM), jnp.float32, -lim2, lim2)
    b2 = jax.random.uniform(k4, (1, OUT_DIM), jnp.float32, -lim2, lim2)
    return w1, b1, w2, b2


if __name__ == "__main__":
    key = jax.random.PRNGKey(0)
    kz, kp = jax.random.split(key)
    B = 8
    z = jax.random.normal(kz, (B, Z_DIM), jnp.float32)
    w1, b1, w2, b2 = init_params(kp)

    img = generator_forward(z, w1, b1, w2, b2)
    jax.block_until_ready(img)
    assert img.shape == (B, *IMG_SHAPE)

    # reference with matching bf16-input / f32-accumulate precision
    z_bf, w1_bf, w2_bf = (z.astype(jnp.bfloat16), w1.astype(jnp.bfloat16),
                          w2.astype(jnp.bfloat16))
    h_ref = jnp.dot(z_bf, w1_bf, preferred_element_type=jnp.float32) + b1
    h_ref = jnp.where(h_ref > 0, h_ref, 0.2 * h_ref)
    o_ref = jnp.dot(h_ref.astype(jnp.bfloat16), w2_bf,
                    preferred_element_type=jnp.float32) + b2
    ref = jnp.tanh(o_ref).reshape((B, *IMG_SHAPE))
    assert jnp.allclose(img, ref, atol=2e-3), "mismatch vs bf16 reference"

    # loose sanity check vs the full-f32 PyTorch-equivalent math
    h32 = z @ w1 + b1
    h32 = jnp.where(h32 > 0, h32, 0.2 * h32)
    ref32 = jnp.tanh(h32 @ w2 + b2).reshape((B, *IMG_SHAPE))
    assert jnp.allclose(img, ref32, atol=5e-2), "mismatch vs f32 reference"

    print("KERNEL_OK")
</pallas_src>

<mosaic_0001>
module attributes {stable_mosaic.version = 11 : i64} {
  func.func @generator_kernel(%arg0: i32, %arg1: memref<8x128xbf16, #tpu.memory_space<vmem>>, %arg2: memref<128x32xbf16, #tpu.memory_space<vmem>>, %arg3: memref<1x32xf32, #tpu.memory_space<vmem>>, %arg4: memref<32x2xbf16, #tpu.memory_space<vmem>>, %arg5: memref<1x2xf32, #tpu.memory_space<vmem>>, %arg6: memref<8x2xf32, #tpu.memory_space<vmem>>) attributes {dimension_semantics = [#tpu.dimension_semantics<parallel>], iteration_bounds = array<i64: 1>, scalar_prefetch = 0 : i64, scratch_operands = 0 : i64, tpu.core_type = #tpu.core_type<tc>, window_params = [{transform_indices = @transform_0, window_bounds = array<i64: 8, 128>}, {pipeline_mode = #tpu.pipeline_mode<synchronous>, transform_indices = @transform_1, window_bounds = array<i64: 128, 32>}, {pipeline_mode = #tpu.pipeline_mode<synchronous>, transform_indices = @transform_2, window_bounds = array<i64: 1, 32>}, {pipeline_mode = #tpu.pipeline_mode<synchronous>, transform_indices = @transform_3, window_bounds = array<i64: 32, 2>}, {pipeline_mode = #tpu.pipeline_mode<synchronous>, transform_indices = @transform_4, window_bounds = array<i64: 1, 2>}, {transform_indices = @transform_5, window_bounds = array<i64: 8, 2>}]} {
    %c0 = arith.constant 0 : index
    %c0_0 = arith.constant 0 : index
    %0 = vector.load %arg1[%c0, %c0_0] : memref<8x128xbf16, #tpu.memory_space<vmem>>, vector<8x128xbf16>
    %c0_1 = arith.constant 0 : index
    %c0_2 = arith.constant 0 : index
    %1 = vector.load %arg2[%c0_1, %c0_2] : memref<128x32xbf16, #tpu.memory_space<vmem>>, vector<128x32xbf16>
    %cst = arith.constant dense<0.000000e+00> : vector<8x32xf32>
    %2 = tpu.matmul %0, %1, %cst {dimension_numbers = #tpu.dot_dimension_numbers<[1], [0], [0], [1], [0, 0, 1, 1], [], []>} : vector<8x128xbf16>, vector<128x32xbf16>, vector<8x32xf32> -> vector<8x32xf32>
    %c0_3 = arith.constant 0 : index
    %c0_4 = arith.constant 0 : index
    %3 = vector.load %arg3[%c0_3, %c0_4] : memref<1x32xf32, #tpu.memory_space<vmem>>, vector<1x32xf32>
    %4 = vector.broadcast %3 : vector<1x32xf32> to vector<8x32xf32>
    %5 = arith.addf %2, %4 : vector<8x32xf32>
    %cst_5 = arith.constant 0.000000e+00 : f32
    %6 = vector.broadcast %cst_5 : f32 to vector<8x32xf32>
    %7 = arith.cmpf ogt, %5, %6 : vector<8x32xf32>
    %cst_6 = arith.constant 2.000000e-01 : f32
    %8 = vector.broadcast %cst_6 : f32 to vector<8x32xf32>
    %9 = arith.mulf %8, %5 : vector<8x32xf32>
    %10 = arith.select %7, %5, %9 : vector<8x32xi1>, vector<8x32xf32>
    %11 = arith.truncf %10 : vector<8x32xf32> to vector<8x32xbf16>
    %c0_7 = arith.constant 0 : index
    %c0_8 = arith.constant 0 : index
    %12 = vector.load %arg4[%c0_7, %c0_8] : memref<32x2xbf16, #tpu.memory_space<vmem>>, vector<32x2xbf16>
    %cst_9 = arith.constant dense<0.000000e+00> : vector<8x2xf32>
    %13 = tpu.matmul %11, %12, %cst_9 {dimension_numbers = #tpu.dot_dimension_numbers<[1], [0], [0], [1], [0, 0, 1, 1], [], []>} : vector<8x32xbf16>, vector<32x2xbf16>, vector<8x2xf32> -> vector<8x2xf32>
    %c0_10 = arith.constant 0 : index
    %c0_11 = arith.constant 0 : index
    %14 = vector.load %arg5[%c0_10, %c0_11] : memref<1x2xf32, #tpu.memory_space<vmem>>, vector<1x2xf32>
    %15 = vector.broadcast %14 : vector<1x2xf32> to vector<8x2xf32>
    %16 = arith.addf %13, %15 : vector<8x2xf32>
    %17 = math.tanh %16 : vector<8x2xf32>
    %c0_12 = arith.constant 0 : index
    %c0_13 = arith.constant 0 : index
    %18 = vector.load %arg6[%c0_12, %c0_13] : memref<8x2xf32, #tpu.memory_space<vmem>>, vector<8x2xf32>
    tpu.vector_store %arg6[%c0_12, %c0_13], %17 {strides = array<i32>} : memref<8x2xf32, #tpu.memory_space<vmem>>, vector<8x2xf32>,
    return
  }
  func.func @transform_0(%arg0: i32) -> (i32, i32) {
    %c0_i32 = arith.constant 0 : i32
    %c0_i32_0 = arith.constant 0 : i32
    return %arg0, %c0_i32 : i32, i32
  }
  func.func @transform_1(%arg0: i32) -> (i32, i32) {
    %c0_i32 = arith.constant 0 : i32
    %c0_i32_0 = arith.constant 0 : i32
    %c0_i32_1 = arith.constant 0 : i32
    return %c0_i32, %c0_i32_0 : i32, i32
  }
  func.func @transform_2(%arg0: i32) -> (i32, i32) {
    %c0_i32 = arith.constant 0 : i32
    %c0_i32_0 = arith.constant 0 : i32
    %c0_i32_1 = arith.constant 0 : i32
    return %c0_i32, %c0_i32_0 : i32, i32
  }
  func.func @transform_3(%arg0: i32) -> (i32, i32) {
    %c0_i32 = arith.constant 0 : i32
    %c0_i32_0 = arith.constant 0 : i32
    %c0_i32_1 = arith.constant 0 : i32
    return %c0_i32, %c0_i32_0 : i32, i32
  }
  func.func @transform_4(%arg0: i32) -> (i32, i32) {
    %c0_i32 = arith.constant 0 : i32
    %c0_i32_0 = arith.constant 0 : i32
    %c0_i32_1 = arith.constant 0 : i32
    return %c0_i32, %c0_i32_0 : i32, i32
  }
  func.func @transform_5(%arg0: i32) -> (i32, i32) {
    %c0_i32 = arith.constant 0 : i32
    %c0_i32_0 = arith.constant 0 : i32
    return %arg0, %c0_i32 : i32, i32
  }
}

</mosaic_0001>

<bundles_post_ra>
// kernel: generator_forward.1
= control target key start
LH: loop header
LB: loop body
LE: loop exit
PB: predicated region body
PF: predicated region fallthrough
CT: control target
= control target key end

     0   :  { %v278_v0 = vmov 0.0   ;;  %vm279_vm0 = vmmov 0   ;;  %vm160_vm2 = vcmask 261120   ;;  %vm205_vm3 = vcmask 15360   ;;  %s352_s1 = inlined_call_operand.vmem [shape: bf16[128,32], index: 1, kind: input, shape index: {}]   ;;  %s353_s0 = inlined_call_operand.vmem [shape: bf16[8,128], index: 0, kind: input, shape index: {}]   ;;  %s354_s3 = inlined_call_operand.vmem [shape: bf16[32,2], index: 3, kind: input, shape index: {}]   ;;  %s355_s2 = inlined_call_operand.vmem [shape: f32[1,32], index: 2, kind: input, shape index: {}]   ;;  %s356_s4 = inlined_call_operand.vmem [shape: f32[1,2], index: 4, kind: input, shape index: {}]   ;;  %s357_s5 = inlined_call_operand.vmem [shape: f32[8,2], index: 5, kind: output, shape index: {}]  }
   0x1   :  { %236 = vmatprep.subr.bf16.mxu0 %v278_v0  ;;  %v266_v1 = vld [vmem:[%s352_s1 + $0x38] sm:$0xff]   ;;  %252 = vmatprep.mubr.msk.bf16.mxu0 %vm279_vm0, %v278_v0  ;;  %v267_v2 = vld [vmem:[%s352_s1 + $0x30] sm:$0xff]   ;;  %v268_v3 = vld [vmem:[%s352_s1 + $0x28] sm:$0xff]  }
   0x2   :  { %256 = vmatprep.subr.bf16.mxu1 %v278_v0  ;;  %260 = vmatprep.mubr.msk.bf16.mxu1 %vm279_vm0, %v278_v0  ;;  %v269_v4 = vld [vmem:[%s352_s1 + $0x20] sm:$0xff]   ;;  %v270_v5 = vld [vmem:[%s352_s1 + $0x18] sm:$0xff]   ;;  %v271_v6 = vld [vmem:[%s352_s1 + $0x10] sm:$0xff]  }
   0x3   :  { %237 = vmatpush3.bf16.msra.mxu0 %v266_v1  ;;  %v272_v7 = vld [vmem:[%s352_s1 + $0x8] sm:$0xff]   ;;  %v273_v8 = vld [vmem:[%s352_s1] sm:$0xff]  }
   0x4   :  { %238 = vmatprep.subr.bf16.mxu0 %v278_v0  ;;  %v21_v9 = vld [vmem:[%s353_s0] sm:$0xf]  ;;  %v274_v10 = vld [vmem:[%s354_s3 + $0x8] sm:$0xff]  }
   0x5   :  { %257 = vmatpush3.bf16.msra.mxu1 %v274_v10  ;;  %v275_v11 = vld [vmem:[%s354_s3] sm:$0xff]  }
   0x6   :  { %258 = vmatprep.subr.bf16.mxu1 %v278_v0  ;;  %v211_v12 = vld [vmem:[%s355_s2] ss:$0 sm:$0xff] }
   0x7   :  { %239 = vmatpush3.bf16.msra.mxu0 %v267_v2  ;;  %v220_v21 = vld [vmem:[%s356_s4] ss:$0 sm:$0xff] }
   0x8   :  { %240 = vmatprep.subr.bf16.mxu0 %v278_v0 }
   0x9   :  { %259 = vmatpush3.bf16.msra.mxu1 %v275_v11 }
   0xb   :  { %241 = vmatpush3.bf16.msra.mxu0 %v268_v3 }
   0xc   :  { %242 = vmatprep.subr.bf16.mxu0 %v278_v0 }
   0xf   :  { %243 = vmatpush3.bf16.msra.mxu0 %v269_v4 }
  0x10   :  { %244 = vmatprep.subr.bf16.mxu0 %v278_v0 }
  0x13   :  { %245 = vmatpush3.bf16.msra.mxu0 %v270_v5 }
  0x14   :  { %246 = vmatprep.subr.bf16.mxu0 %v278_v0 }
  0x17   :  { %247 = vmatpush3.bf16.msra.mxu0 %v271_v6 }
  0x18   :  { %248 = vmatprep.subr.bf16.mxu0 %v278_v0 }
  0x1b   :  { %249 = vmatpush3.bf16.msra.mxu0 %v272_v7 }
  0x1c   :  { %250 = vmatprep.subr.bf16.mxu0 %v278_v0 }
  0x1f   :  { %251 = vmatpush3.bf16.msra.mxu0 %v273_v8 }
  0x22   :  { %253 = vmatmul.mubr.bf16.vlgmr.msra.gmra.mxu0 %v21_v9 }
  0xe2   :  { %v127_v13 = vpop.f32.mrf.mxu0 }
  0xe3   :  { %v128_v14 = vadd.f32 %v211_v12, %v127_v13 }
  0xe4   :  { %v254_v15 = vpop.f32.mrf.mxu0 }
  0xe5   :  { %vm133_vm1 = vcmp.gt.f32.partialorder %v128_v14, 0.0  ;;  %v134_v16 = vmul.f32 0.2, %v128_v14 }
  0xe6   :  { %v130_v17 = vpop.f32.mrf.mxu0 }
  0xe7   :  { %v135_v18 = vsel %vm133_vm1, %v128_v14, %v134_v16 }
  0xe8   :  { %v136_v19 = vpack.c.bf16 %v135_v18, %v135_v18  ;;  %v255_v20 = vpop.f32.mrf.mxu0 }
  0xea   :  { %261 = vmatmul.mubr.msk.bf16.vlgmr.msra.gmra.mxu1 %vm160_vm2, %v136_v19 }
 0x1aa   :  { %v198_v22 = vpop.f32.mrf.mxu1 }
 0x1ab   :  { %v199_v23 = vadd.f32 %v220_v21, %v198_v22 }
 0x1ac   :  { %v262_v24 = vpop.f32.mrf.mxu1 }
 0x1ad   :  { %276 = vtanh.f32 %v199_v23 }
 0x1ae   :  { %v201_v25 = vpop.f32.mrf.mxu1 }
 0x1b0   :  { %v263_v26 = vpop.f32.mrf.mxu1 }
 0x1ba   :  { %v277_v27 = vpop.eup %276 }
 0x1bb   :  { %206 = vst.msk [vmem:[%s357_s5] sm:$0xff] %vm205_vm3, %v277_v27 }

</bundles_post_ra>
